<compile_context>
chip_gen: v7x
topology: tpu7x:2x2x1
jax: 0.10.0
libtpu: 0.0.40
codegen_flags: <defaults>
</compile_context>

<pallas_src>
import functools

import jax
import jax.numpy as jnp
from jax.experimental import pallas as pl
from jax.experimental.pallas import tpu as pltpu


def _round_up(x: int, m: int) -> int:
    return ((x + m - 1) // m) * m


def _cdiv(a: int, b: int) -> int:
    return -(-a // b)


def _landmark_js_kernel(xy_ref, hm_ref, tg_ref, out_ref, *,
                        sigma_t, H, W, n_rows_valid, tiles_per_slice):
    """Accumulates sum of per-landmark JS regularization losses for one slice."""
    s = pl.program_id(0)   # parallel slice (megacore on v7x)
    i = pl.program_id(1)   # sequential tile within the slice

    @pl.when(i == 0)
    def _init():
        out_ref[...] = jnp.zeros_like(out_ref)

    eps = 1e-24
    R, HW = hm_ref.shape

    p = hm_ref[...].astype(jnp.float32)          # [R, HW] predicted heatmaps
    tg = tg_ref[...].astype(jnp.float32)         # [R, 2]  target coords (x, y) in [-1, 1]
    mu_x = tg[:, 0:1]                            # [R, 1]
    mu_y = tg[:, 1:2]                            # [R, 1]

    xc = xy_ref[0:1, :]                          # [1, HW] precomputed pixel x coords
    yc = xy_ref[1:2, :]                          # [1, HW] precomputed pixel y coords

    # ---- dsntnn.make_gauss: single fused exp per pixel ----
    # stddev_x = 2*sigma/W, stddev_y = 2*sigma/H  =>  k = -0.5 / stddev^2
    kx = -0.5 * (W / (2.0 * sigma_t)) ** 2
    ky = -0.5 * (H / (2.0 * sigma_t)) ** 2
    dx = xc - mu_x                               # [R, HW]
    dy = yc - mu_y                               # [R, HW]
    gauss = jnp.exp(kx * (dx * dx) + ky * (dy * dy))
    inv_norm = pl.reciprocal(jnp.sum(gauss, axis=1, keepdims=True) + eps)   # [R, 1]
    g = gauss * inv_norm

    # ---- dsntnn.js_reg_losses (log-difference form, no per-pixel reciprocal) ----
    m_mix = 0.5 * (p + g)
    log_m = jnp.log(m_mix + eps)
    js_term = p * (jnp.log(p + eps) - log_m) + g * (jnp.log(g + eps) - log_m)
    js_row = 0.5 * jnp.sum(js_term, axis=1, keepdims=True)                  # [R, 1]

    # Mask rows beyond the valid B*N range (ragged last tile and clamped
    # duplicate tiles).  Select AFTER the row reduction so garbage rows
    # (possibly NaN/Inf) are fully discarded.
    tile_idx = s * tiles_per_slice + i
    row_ids = tile_idx * R + jax.lax.broadcasted_iota(jnp.int32, (R, 1), 0)
    js_row = jnp.where(row_ids < n_rows_valid, js_row, 0.0)

    # Accumulate this tile's partial sum into this slice's (8,128) output block
    # (value broadcast over the block; the wrapper reads element [0, 0]).
    out_ref[...] += jnp.sum(js_row)


def landmark_loss(outputs, targets, sigma_t: float = 1.0,
                  rows_per_tile: int | None = None,
                  num_slices: int | None = None):
    """JAX/Pallas equivalent of LandmarkLoss.forward."""
    coords, heatmaps = outputs
    B, N, H, W = heatmaps.shape
    HW = H * W
    BN = B * N

    # Lane-dense flattening only; NO dtype upcast and NO padding copies.
    hm = heatmaps.reshape(BN, HW)
    tg = targets.reshape(BN, 2)
    co = coords.reshape(BN, 2)

    # Row-tile size: large enough to amortize per-step overhead, capped so
    # ~8 live f32 [R, HW] tiles (input double-buffer + temporaries) stay under
    # ~12 MiB -> comfortable even for v7x's 32 MiB scoped-VMEM default.
    if rows_per_tile is None:
        rows_per_tile = 512
    r_cap = max(8, (((12 << 20) // (HW * 4 * 8)) // 8) * 8)
    R = max(8, min(_round_up(rows_per_tile, 8), _round_up(BN, 8), r_cap))
    n_tiles = _cdiv(BN, R)

    # Megacore split (v7x has 2 TensorCores); harmless loop reorder on 1-TC chips.
    if num_slices is None:
        num_slices = 2 if n_tiles >= 8 else 1
    num_slices = max(1, min(num_slices, n_tiles))
    tps = _cdiv(n_tiles, num_slices)             # tiles per slice

    # Precomputed pixel-coordinate grid (resident block, DMA'd once).
    idx = jnp.arange(HW, dtype=jnp.int32)
    xc = (2.0 * (idx % W).astype(jnp.float32) + 1.0) / W - 1.0
    yc = (2.0 * (idx // W).astype(jnp.float32) + 1.0) / H - 1.0
    xy = jnp.stack([xc, yc], axis=0)             # [2, HW]

    def tile_map(s, i):
        # Clamp so slices that over-cover (n_tiles % num_slices != 0) stay
        # in-bounds; the duplicated tile is zeroed out by the in-kernel mask.
        return (jnp.minimum(s * tps + i, n_tiles - 1), 0)

    kernel = functools.partial(
        _landmark_js_kernel,
        sigma_t=float(sigma_t), H=H, W=W,
        n_rows_valid=BN, tiles_per_slice=tps,
    )

    js_partials = pl.pallas_call(
        kernel,
        out_shape=jax.ShapeDtypeStruct((8 * num_slices, 128), jnp.float32),
        grid_spec=pltpu.PrefetchScalarGridSpec(
            num_scalar_prefetch=0,
            grid=(num_slices, tps),
            in_specs=[
                pl.BlockSpec((2, HW), lambda s, i: (0, 0)),   # pixel grid (resident)
                pl.BlockSpec((R, HW), tile_map),              # heatmaps tile (lane-dense)
                pl.BlockSpec((R, 2), tile_map),               # target coords rows
            ],
            out_specs=pl.BlockSpec((8, 128), lambda s, i: (s, 0)),
        ),
        compiler_params=pltpu.CompilerParams(
            dimension_semantics=("parallel", "arbitrary"),
        ),
        cost_estimate=pl.CostEstimate(
            flops=20 * BN * HW,
            transcendentals=4 * BN * HW,
            bytes_accessed=BN * HW * hm.dtype.itemsize + BN * 2 * 4
                           + 8 * num_slices * 128 * 4,
        ),
    )(xy, hm, tg)

    js_sum = jnp.sum(js_partials[0::8, 0])

    # dsntnn.euclidean_losses: O(BN), negligible -> plain JAX in the wrapper.
    diff = co.astype(jnp.float32) - tg.astype(jnp.float32)
    euc_sum = jnp.sum(jnp.sqrt(jnp.sum(diff * diff, axis=-1)))

    # dsntnn.average_loss: mean over all (batch, point)
    loss = (js_sum + euc_sum) / BN
    return {"total_loss": loss}


def _landmark_loss_ref(coords, heatmaps, targets, sigma_t=1.0):
    """Pure-JAX reference mirroring the dsntnn semantics (for validation)."""
    p = heatmaps.astype(jnp.float32)
    B, N, H, W = p.shape
    eps = 1e-24
    xs = (2.0 * jnp.arange(W, dtype=jnp.float32) + 1.0) / W - 1.0
    ys = (2.0 * jnp.arange(H, dtype=jnp.float32) + 1.0) / H - 1.0
    kx = -0.5 * (W / (2.0 * sigma_t)) ** 2
    ky = -0.5 * (H / (2.0 * sigma_t)) ** 2
    mu_x = targets[..., 0][..., None, None]
    mu_y = targets[..., 1][..., None, None]
    gauss = jnp.exp(kx * (xs[None, None, None, :] - mu_x) ** 2) * \
            jnp.exp(ky * (ys[None, None, :, None] - mu_y) ** 2)
    gauss = gauss / (jnp.sum(gauss, axis=(2, 3), keepdims=True) + eps)
    m = 0.5 * (p + gauss)
    kl_pm = jnp.sum(p * (jnp.log(p + eps) - jnp.log(m + eps)), axis=(2, 3))
    kl_qm = jnp.sum(gauss * (jnp.log(gauss + eps) - jnp.log(m + eps)), axis=(2, 3))
    js = 0.5 * kl_pm + 0.5 * kl_qm
    euc = jnp.sqrt(jnp.sum((coords - targets) ** 2, axis=-1))
    return jnp.mean(euc + js)


def _make_inputs(key, B, N, H, W):
    k1, k2, k3 = jax.random.split(key, 3)
    logits = jax.random.normal(k1, (B, N, H, W), jnp.float32)
    heatmaps = jax.nn.softmax(logits.reshape(B, N, H * W), axis=-1).reshape(B, N, H, W)
    coords = jax.random.uniform(k2, (B, N, 2), jnp.float32, minval=-1.0, maxval=1.0)
    targets = jax.random.uniform(k3, (B, N, 2), jnp.float32, minval=-1.0, maxval=1.0)
    return coords, heatmaps, targets


if __name__ == "__main__":
    key = jax.random.PRNGKey(0)
    ka, kb = jax.random.split(key)

    # Case 1: the module's nominal small shape (single tile, single slice).
    B, N, H, W = 2, 4, 16, 16
    coords, heatmaps, targets = _make_inputs(ka, B, N, H, W)
    loss = jax.block_until_ready(
        landmark_loss((coords, heatmaps), targets, sigma_t=1.0)["total_loss"])
    ref = _landmark_loss_ref(coords, heatmaps, targets, sigma_t=1.0)
    assert jnp.allclose(loss, ref, rtol=2e-5, atol=2e-5), (float(loss), float(ref))

    # Case 2: exercise ragged last tile + clamped duplicate tile + 2 parallel slices.
    B2, N2 = 3, 37  # BN = 111, rows_per_tile=16 -> 7 tiles over 2 slices of 4
    coords2, heatmaps2, targets2 = _make_inputs(kb, B2, N2, H, W)
    loss2 = jax.block_until_ready(
        landmark_loss((coords2, heatmaps2), targets2, sigma_t=1.0,
                      rows_per_tile=16, num_slices=2)["total_loss"])
    ref2 = _landmark_loss_ref(coords2, heatmaps2, targets2, sigma_t=1.0)
    assert jnp.allclose(loss2, ref2, rtol=2e-5, atol=2e-5), (float(loss2), float(ref2))

    print("KERNEL_OK")
</pallas_src>

<mosaic_0001>
module attributes {stable_mosaic.version = 11 : i64} {
  func.func @_landmark_js_kernel(%arg0: i32, %arg1: i32, %arg2: memref<2x256xf32, #tpu.memory_space<vmem>>, %arg3: memref<8x256xf32, #tpu.memory_space<vmem>>, %arg4: memref<8x2xf32, #tpu.memory_space<vmem>>, %arg5: memref<8x128xf32, #tpu.memory_space<vmem>>) attributes {dimension_semantics = [#tpu.dimension_semantics<parallel>, #tpu.dimension_semantics<arbitrary>], iteration_bounds = array<i64: 1, 1>, scalar_prefetch = 0 : i64, scratch_operands = 0 : i64, tpu.core_type = #tpu.core_type<tc>, window_params = [{pipeline_mode = #tpu.pipeline_mode<synchronous>, transform_indices = @transform_0, window_bounds = array<i64: 2, 256>}, {transform_indices = @transform_1, window_bounds = array<i64: 8, 256>}, {transform_indices = @transform_2, window_bounds = array<i64: 8, 2>}, {transform_indices = @transform_3, window_bounds = array<i64: 8, 128>}]} {
    %c0_i32 = arith.constant 0 : i32
    %0 = arith.cmpi eq, %arg1, %c0_i32 : i32
    %1 = arith.extui %0 : i1 to i32
    %c0_i32_0 = arith.constant 0 : i32
    %2 = arith.cmpi ne, %1, %c0_i32_0 : i32
    scf.if %2 {
      %cst_23 = arith.constant 0.000000e+00 : f32
      %69 = vector.broadcast %cst_23 : f32 to vector<8x128xf32>
      %c0_24 = arith.constant 0 : index
      %c0_25 = arith.constant 0 : index
      %70 = vector.load %arg5[%c0_24, %c0_25] : memref<8x128xf32, #tpu.memory_space<vmem>>, vector<8x128xf32>
      tpu.vector_store %arg5[%c0_24, %c0_25], %69 {strides = array<i32>} : memref<8x128xf32, #tpu.memory_space<vmem>>, vector<8x128xf32>,
    } else {
    }
    %c0 = arith.constant 0 : index
    %c0_1 = arith.constant 0 : index
    %3 = vector.load %arg3[%c0, %c0_1] : memref<8x256xf32, #tpu.memory_space<vmem>>, vector<8x256xf32>
    %c0_2 = arith.constant 0 : index
    %c0_3 = arith.constant 0 : index
    %4 = vector.load %arg4[%c0_2, %c0_3] : memref<8x2xf32, #tpu.memory_space<vmem>>, vector<8x2xf32>
    %5 = vector.extract_strided_slice %4 {offsets = [0, 0], sizes = [8, 1], strides = [1, 1]} : vector<8x2xf32> to vector<8x1xf32>
    %6 = vector.extract_strided_slice %4 {offsets = [0, 1], sizes = [8, 1], strides = [1, 1]} : vector<8x2xf32> to vector<8x1xf32>
    %c0_4 = arith.constant 0 : index
    %c0_5 = arith.constant 0 : index
    %7 = vector.load %arg2[%c0_4, %c0_5] : memref<2x256xf32, #tpu.memory_space<vmem>>, vector<1x256xf32>
    %c1 = arith.constant 1 : index
    %c0_6 = arith.constant 0 : index
    %8 = vector.load %arg2[%c1, %c0_6] : memref<2x256xf32, #tpu.memory_space<vmem>>, vector<1x256xf32>
    %9 = vector.broadcast %7 : vector<1x256xf32> to vector<8x256xf32>
    %10 = vector.broadcast %5 : vector<8x1xf32> to vector<8x256xf32>
    %11 = arith.subf %9, %10 : vector<8x256xf32>
    %12 = vector.broadcast %8 : vector<1x256xf32> to vector<8x256xf32>
    %13 = vector.broadcast %6 : vector<8x1xf32> to vector<8x256xf32>
    %14 = arith.subf %12, %13 : vector<8x256xf32>
    %15 = arith.mulf %11, %11 : vector<8x256xf32>
    %cst = arith.constant -3.200000e+01 : f32
    %16 = vector.broadcast %cst : f32 to vector<8x256xf32>
    %17 = arith.mulf %16, %15 : vector<8x256xf32>
    %18 = arith.mulf %14, %14 : vector<8x256xf32>
    %cst_7 = arith.constant -3.200000e+01 : f32
    %19 = vector.broadcast %cst_7 : f32 to vector<8x256xf32>
    %20 = arith.mulf %19, %18 : vector<8x256xf32>
    %21 = arith.addf %17, %20 : vector<8x256xf32>
    %22 = math.exp %21 : vector<8x256xf32>
    %cst_8 = arith.constant dense<0.000000e+00> : vector<8xf32>
    %23 = vector.multi_reduction <add>, %22, %cst_8 [1] : vector<8x256xf32> to vector<8xf32>
    %24 = vector.shape_cast %23 : vector<8xf32> to vector<8x1xf32>
    %cst_9 = arith.constant 1.000000e-24 : f32
    %25 = vector.broadcast %cst_9 : f32 to vector<8x1xf32>
    %26 = arith.addf %24, %25 : vector<8x1xf32>
    %27 = tpu.reciprocal %26 : vector<8x1xf32> -> vector<8x1xf32>
    %28 = vector.broadcast %27 : vector<8x1xf32> to vector<8x256xf32>
    %29 = arith.mulf %22, %28 : vector<8x256xf32>
    %30 = arith.addf %3, %29 : vector<8x256xf32>
    %cst_10 = arith.constant 5.000000e-01 : f32
    %31 = vector.broadcast %cst_10 : f32 to vector<8x256xf32>
    %32 = arith.mulf %31, %30 : vector<8x256xf32>
    %cst_11 = arith.constant 1.000000e-24 : f32
    %33 = vector.broadcast %cst_11 : f32 to vector<8x256xf32>
    %34 = arith.addf %32, %33 : vector<8x256xf32>
    %35 = math.log %34 : vector<8x256xf32>
    %cst_12 = arith.constant 1.000000e-24 : f32
    %36 = vector.broadcast %cst_12 : f32 to vector<8x256xf32>
    %37 = arith.addf %3, %36 : vector<8x256xf32>
    %38 = math.log %37 : vector<8x256xf32>
    %39 = arith.subf %38, %35 : vector<8x256xf32>
    %40 = arith.mulf %3, %39 : vector<8x256xf32>
    %cst_13 = arith.constant 1.000000e-24 : f32
    %41 = vector.broadcast %cst_13 : f32 to vector<8x256xf32>
    %42 = arith.addf %29, %41 : vector<8x256xf32>
    %43 = math.log %42 : vector<8x256xf32>
    %44 = arith.subf %43, %35 : vector<8x256xf32>
    %45 = arith.mulf %29, %44 : vector<8x256xf32>
    %46 = arith.addf %40, %45 : vector<8x256xf32>
    %cst_14 = arith.constant dense<0.000000e+00> : vector<8xf32>
    %47 = vector.multi_reduction <add>, %46, %cst_14 [1] : vector<8x256xf32> to vector<8xf32>
    %48 = vector.shape_cast %47 : vector<8xf32> to vector<8x1xf32>
    %cst_15 = arith.constant 5.000000e-01 : f32
    %49 = vector.broadcast %cst_15 : f32 to vector<8x1xf32>
    %50 = arith.mulf %49, %48 : vector<8x1xf32>
    %c1_i32 = arith.constant 1 : i32
    %51 = arith.muli %arg0, %c1_i32 : i32
    %52 = arith.addi %51, %arg1 : i32
    %c8_i32 = arith.constant 8 : i32
    %53 = arith.muli %52, %c8_i32 : i32
    %54 = tpu.iota {dimensions = array<i32: 0>} : vector<8x1xi32>
    %55 = vector.broadcast %53 : i32 to vector<8x1xi32>
    %56 = arith.addi %55, %54 : vector<8x1xi32>
    %c8_i32_16 = arith.constant 8 : i32
    %57 = vector.broadcast %c8_i32_16 : i32 to vector<8x1xi32>
    %58 = arith.cmpi slt, %56, %57 : vector<8x1xi32>
    %cst_17 = arith.constant 0.000000e+00 : f32
    %59 = vector.broadcast %cst_17 : f32 to vector<8x1xf32>
    %60 = arith.select %58, %50, %59 : vector<8x1xi1>, vector<8x1xf32>
    %c0_18 = arith.constant 0 : index
    %c0_19 = arith.constant 0 : index
    %61 = vector.load %arg5[%c0_18, %c0_19] : memref<8x128xf32, #tpu.memory_space<vmem>>, vector<8x128xf32>
    %62 = vector.shape_cast %60 : vector<8x1xf32> to vector<1x8x1xf32>
    %cst_20 = arith.constant dense<0.000000e+00> : vector<1xf32>
    %63 = vector.multi_reduction <add>, %62, %cst_20 [1, 2] : vector<1x8x1xf32> to vector<1xf32>
    %64 = vector.shape_cast %63 : vector<1xf32> to vector<1x1x1xf32>
    %65 = vector.extract %64[0, 0, 0] : f32 from vector<1x1x1xf32>
    %66 = vector.broadcast %65 : f32 to vector<8x128xf32>
    %67 = arith.addf %61, %66 : vector<8x128xf32>
    %c0_21 = arith.constant 0 : index
    %c0_22 = arith.constant 0 : index
    %68 = vector.load %arg5[%c0_21, %c0_22] : memref<8x128xf32, #tpu.memory_space<vmem>>, vector<8x128xf32>
    tpu.vector_store %arg5[%c0_21, %c0_22], %67 {strides = array<i32>} : memref<8x128xf32, #tpu.memory_space<vmem>>, vector<8x128xf32>,
    return
  }
  func.func @transform_0(%arg0: i32, %arg1: i32) -> (i32, i32) {
    %c0_i32 = arith.constant 0 : i32
    %c0_i32_0 = arith.constant 0 : i32
    %c0_i32_1 = arith.constant 0 : i32
    return %c0_i32, %c0_i32_0 : i32, i32
  }
  func.func @transform_1(%arg0: i32, %arg1: i32) -> (i32, i32) {
    %c1_i32 = arith.constant 1 : i32
    %0 = arith.muli %arg0, %c1_i32 : i32
    %1 = arith.addi %0, %arg1 : i32
    %c0_i32 = arith.constant 0 : i32
    %2 = arith.minsi %1, %c0_i32 : i32
    %c0_i32_0 = arith.constant 0 : i32
    %c0_i32_1 = arith.constant 0 : i32
    return %2, %c0_i32_0 : i32, i32
  }
  func.func @transform_2(%arg0: i32, %arg1: i32) -> (i32, i32) {
    %c1_i32 = arith.constant 1 : i32
    %0 = arith.muli %arg0, %c1_i32 : i32
    %1 = arith.addi %0, %arg1 : i32
    %c0_i32 = arith.constant 0 : i32
    %2 = arith.minsi %1, %c0_i32 : i32
    %c0_i32_0 = arith.constant 0 : i32
    %c0_i32_1 = arith.constant 0 : i32
    return %2, %c0_i32_0 : i32, i32
  }
  func.func @transform_3(%arg0: i32, %arg1: i32) -> (i32, i32) {
    %c0_i32 = arith.constant 0 : i32
    %c0_i32_0 = arith.constant 0 : i32
    return %arg0, %c0_i32 : i32, i32
  }
}

</mosaic_0001>

<bundles_post_ra>
// kernel: tpu_custom_call.1
= control target key start
LH: loop header
LB: loop body
LE: loop exit
PB: predicated region body
PF: predicated region fallthrough
CT: control target
= control target key end

     0   :  { %8 = vsyncpa [#allocation3], 0  ;;  %s345_s0 = inlined_call_operand.vmem [shape: f32[2,256], index: 0, kind: input, shape index: {}]   ;;  %s346_s1 = inlined_call_operand.hbm [shape: f32[8,256], index: 1, kind: input, shape index: {}]   ;;  %s347_s2 = inlined_call_operand.vmem [shape: f32[8,2], index: 2, kind: input, shape index: {}]   ;;  %s348_s3 = inlined_call_operand.hbm [shape: f32[8,128], index: 3, kind: output, shape index: {}]  }
   0x1   :  { %9 = vsyncpa [#allocation4], 0  ;;  %s288_s12 = smov [#allocation2]   ;;  %s240_s16 = scalar_lea.hbm %s346_s1, 256 }
   0x2   :  { %s24_s13 = sshll.u32 %s288_s12, 4  ;;  %p241_p0 = scmp.ne.s32.totalorder %s346_s1, %s240_s16  ;;  %s25_s13 = int_to_ptr.vmem [resolvable:$true] %s24_s13 }
   0x3   :  { %p244_p1 = scmp.lt.u32.totalorder %s240_s16, %s346_s1 }
   0x5   :  { %p246_p2 = pnand %p244_p1, %p241_p0 }
   0x7   :  { %249 = shalt.err (!%p246_p2)
}
   0x8   :  { %s250_s21 = scalar_lea.vmem %s25_s13, 256  ;;  %p255_p4 = scmp.lt.s32.totalorder %s25_s13, %s25_s13 }
   0x9   :  { %p251_p3 = scmp.ne.s32.totalorder %s25_s13, %s250_s21  ;;  %p256_p5 = scmp.lt.s32.totalorder %s250_s21, %s250_s21 }
   0xb   :  { %p257_p6 = por %p256_p5, %p255_p4 }
   0xd   :  { %p258_p7 = pnand %p257_p6, %p251_p3 }
   0xf   :  { %261 = shalt.err (!%p258_p7)
}
  0x10   :  { %27 = dma.hbm_to_vmem [thread:$0]  %s346_s1, 256, %s25_s13, [#allocation3]  }
  0x11   :  { %284 = dma.done.wait [#allocation3], 256  }
  0x12   :  { %285 = vsyncadd [#allocation3], 4294967040  ;;  %v289_v0 = vmov 0   ;;  %v70_v1 = vld [vmem:[%s347_s2] sm:$0xff]  ;;  %v290_v2 = vmov 1   ;;  %v75_v3 = vlaneseq  ;;  %v69_v38 = vld [vmem:[#allocation2 + $0x8] sm:$0xff] }
  0x13   :  { %220 = vset.pattern.permute.xlu0 %v289_v0  ;;  %v71_v7 = vld [vmem:[%s345_s0] ss:$2 sm:$0x3]  ;;  %v212_v10 = vld [vmem:[%s345_s0 + $0x1] ss:$2 sm:$0x3] }
  0x14   :  { %87 = vperm.xlu0 %220, %v70_v1   ;;  %v76_v4 = vshrl.u32 %v75_v3, 7  ;;  %v68_v37 = vld [vmem:[#allocation2] sm:$0xff]  ;;  %v141_v42 = vadd.f32 1e-24, %v69_v38  ;;  %vm175_vm0 = vcmask 7168   ;;  %s291_s0 = smov [#allocation5]  }
  0x15   :  { %v140_v41 = vadd.f32 1e-24, %v68_v37  ;;  %s195_s2 = sshll.u32 %s291_s0, 4  ;;  %s196_s2 = int_to_ptr.vmem [resolvable:$true] %s195_s2 }
  0x16   :  { %v77_v5 = vsub.s32 0, %v76_v4  ;;  %v81_v6 = vsub.s32 1, %v76_v4  ;;  %s262_s30 = scalar_lea.vmem %s196_s2, 128  ;;  %p267_p9 = scmp.lt.s32.totalorder %s196_s2, %s196_s2 }
  0x17   :  { %p263_p8 = scmp.ne.s32.totalorder %s196_s2, %s262_s30  ;;  %p268_p10 = scmp.lt.s32.totalorder %s262_s30, %s262_s30 }
  0x18   :  { %221 = vset.pattern.permute.xlu0 %v290_v2  ;;  %v78_v8 = vrot.slane %v71_v7, %v77_v5  ;;  %v82_v9 = vrot.slane %v71_v7, %v81_v6  ;;  %v96_v14 = vrot.slane %v212_v10, %v77_v5  ;;  %v100_v15 = vrot.slane %v212_v10, %v81_v6 }
  0x19   :  { %104 = vperm.xlu0 %221, %v70_v1   ;;  %p269_p11 = por %p268_p10, %p267_p9 }
  0x1b   :  { %p270_p12 = pnand %p269_p11, %p263_p8 }
  0x93   :  { %v88_v11 = vpop.permute.xlu0 %87 }
  0x94   :  { %v90_v12 = vsub.f32 %v78_v8, %v88_v11  ;;  %v91_v13 = vsub.f32 %v82_v9, %v88_v11 }
  0x96   :  { %v109_v17 = vmul.f32 %v90_v12, %v90_v12  ;;  %v110_v18 = vmul.f32 %v91_v13, %v91_v13 }
  0x98   :  { %v105_v16 = vpop.permute.xlu0 %104  ;;  %v111_v23 = vmul.f32 -32.0, %v109_v17  ;;  %v112_v24 = vmul.f32 -32.0, %v110_v18 }
  0x99   :  { %v107_v19 = vsub.f32 %v96_v14, %v105_v16  ;;  %v108_v20 = vsub.f32 %v100_v15, %v105_v16 }
  0x9b   :  { %v113_v21 = vmul.f32 %v107_v19, %v107_v19  ;;  %v114_v22 = vmul.f32 %v108_v20, %v108_v20 }
  0x9d   :  { %v115_v25 = vmul.f32 -32.0, %v113_v21  ;;  %v116_v26 = vmul.f32 -32.0, %v114_v22 }
  0x9f   :  { %v117_v27 = vadd.f32 %v115_v25, %v111_v23  ;;  %v118_v28 = vadd.f32 %v116_v26, %v112_v24 }
  0xa1   :  { %v119_v29 = vmul.f32 1.442695, %v117_v27  ;;  %v121_v30 = vmul.f32 1.442695, %v118_v28 }
  0xa3   :  { %222 = vpow2.f32 %v119_v29 }
  0xa4   :  { %224 = vpow2.f32 %v121_v30 }
  0xad   :  { %v223_v31 = vpop.eup %222 }
  0xae   :  { %v225_v32 = vpop.eup %224 }
  0xaf   :  { %v123_v33 = vadd.f32 %v225_v32, %v223_v31 }
  0xb1   :  { %124 = vadd.xlane.f32.xlu1 %v123_v33 }
 0x13e   :  { %v125_v34 = vpop.xlane.xlu1 %124 }
 0x13f   :  { %v126_v35 = vadd.f32 1e-24, %v125_v34 }
 0x141   :  { %226 = vrcp.f32 %v126_v35 }
 0x142   :  { %228 = vlog2.f32 %v140_v41 }
 0x143   :  { %230 = vlog2.f32 %v141_v42 }
 0x14b   :  { %v227_v36 = vpop.eup %226 }
 0x14c   :  { %v128_v39 = vmul.f32 %v227_v36, %v223_v31  ;;  %v129_v40 = vmul.f32 %v227_v36, %v225_v32  ;;  %v229_v51 = vpop.eup %228 }
 0x14d   :  { %v231_v52 = vpop.eup %230  ;;  %v143_v55 = vmul.f32 0.6931472, %v229_v51 }
 0x14e   :  { %v130_v43 = vadd.f32 %v128_v39, %v68_v37  ;;  %v131_v44 = vadd.f32 %v129_v40, %v69_v38  ;;  %v150_v45 = vadd.f32 1e-24, %v128_v39  ;;  %v151_v46 = vadd.f32 1e-24, %v129_v40 }
 0x14f   :  { %v145_v57 = vmul.f32 0.6931472, %v231_v52 }
 0x150   :  { %v132_v47 = vmul.f32 0.5, %v130_v43  ;;  %v133_v48 = vmul.f32 0.5, %v131_v44  ;;  %232 = vlog2.f32 %v150_v45 }
 0x151   :  { %234 = vlog2.f32 %v151_v46 }
 0x152   :  { %v134_v49 = vadd.f32 1e-24, %v132_v47  ;;  %v135_v50 = vadd.f32 1e-24, %v133_v48 }
 0x154   :  { %236 = vlog2.f32 %v134_v49 }
 0x155   :  { %238 = vlog2.f32 %v135_v50 }
 0x15a   :  { %v233_v53 = vpop.eup %232 }
 0x15b   :  { %v235_v54 = vpop.eup %234  ;;  %v153_v60 = vmul.f32 0.6931472, %v233_v53 }
 0x15c   :  { %v155_v62 = vmul.f32 0.6931472, %v235_v54 }
 0x15e   :  { %v237_v56 = vpop.eup %236 }
 0x15f   :  { %v239_v58 = vpop.eup %238  ;;  %v137_v59 = vmul.f32 0.6931472, %v237_v56 }
 0x160   :  { %v139_v61 = vmul.f32 0.6931472, %v239_v58 }
 0x161   :  { %v146_v63 = vsub.f32 %v143_v55, %v137_v59  ;;  %v156_v0 = vsub.f32 %v153_v60, %v137_v59 }
 0x162   :  { %v147_v1 = vsub.f32 %v145_v57, %v139_v61  ;;  %v157_v2 = vsub.f32 %v155_v62, %v139_v61 }
 0x163   :  { %v148_v3 = vmul.f32 %v146_v63, %v68_v37  ;;  %v158_v4 = vmul.f32 %v156_v0, %v128_v39 }
 0x164   :  { %v149_v5 = vmul.f32 %v147_v1, %v69_v38  ;;  %v159_v6 = vmul.f32 %v157_v2, %v129_v40 }
 0x165   :  { %v160_v7 = vadd.f32 %v158_v4, %v148_v3 }
 0x166   :  { %v161_v8 = vadd.f32 %v159_v6, %v149_v5 }
 0x168   :  { %v162_v9 = vadd.f32 %v161_v8, %v160_v7 }
 0x16a   :  { %163 = vadd.xlane.f32.xlu1 %v162_v9 }
 0x1f7   :  { %v164_v10 = vpop.xlane.xlu1 %163 }
 0x1f8   :  { %v165_v11 = vmul.f32 0.5, %v164_v10 }
 0x1fa   :  { %v176_v12 = vsel %vm175_vm0, %v165_v11, 0.0 }
 0x1fb   :  { %177 = vadd.xlane.f32.xlu1 %v176_v12 }
 0x288   :  { %v178_v13 = vpop.xlane.xlu1 %177 }
 0x289   :  { %v179_v14 = vrot.slane %v178_v13, 4 }
 0x28b   :  { %v180_v15 = vadd.f32 %v179_v14, %v178_v13 }
 0x28d   :  { %v181_v16 = vrot.slane %v180_v15, 2 }
 0x28f   :  { %v182_v17 = vadd.f32 %v181_v16, %v180_v15 }
 0x291   :  { %v183_v18 = vrot.slane %v182_v17, 1 }
 0x293   :  { %v184_v19 = vadd.f32 %v183_v18, %v182_v17 }
 0x295   :  { %213 = vpush %v184_v19 }
 0x2c6   :  { %s214_s29 = spop %213 }
 0x2c7   :  { %v186_v20 = vstv %s214_s29 }
 0x2c8   :  { %188 = vst [vmem:[#allocation5] sm:$0xff] %v186_v20 }
 0x2c9   :  { %273 = shalt.err (!%p270_p12)
}
 0x2ca   :  { %s274_s6 = scalar_lea.hbm %s348_s3, 128 }
 0x2cb   :  { %p275_p13 = scmp.ne.s32.totalorder %s348_s3, %s274_s6  ;;  %p278_p0 = scmp.lt.u32.totalorder %s274_s6, %s348_s3 }
 0x2cd   :  { %p280_p1 = pnand %p278_p0, %p275_p13 }
 0x2cf   :  { %283 = shalt.err (!%p280_p1)
}
 0x2d0   :  { %198 = dma.vmem_to_hbm [thread:$0]  %s196_s2, 128, %s348_s3, [#allocation4]  }
 0x2d1   :  { %286 = dma.done.wait [#allocation4], 128  }
 0x2d2   :  { %287 = vsyncadd [#allocation4], 4294967168 }
 0x2d3   :  { %202 = vsyncpa [#allocation3], 1 }
 0x2d4   :  { %203 = vsyncpa [#allocation4], 1 }

</bundles_post_ra>
